<compile_context>
chip_gen: v6e
topology: v6e:2x2x1
jax: 0.10.0
libtpu: 0.0.40
codegen_flags: <defaults>
</compile_context>

<pallas_src>
import functools

import jax
import jax.numpy as jnp
from jax.experimental import pallas as pl
from jax.experimental.pallas import tpu as pltpu

BN_EPS = 1e-5
LANES = 128
SUBLANES = 8
# Conservative scoped-VMEM budget for sizing the batch tile: fits v5e's 16 MiB
# default scoped VMEM and leaves headroom on v7x (64 MiB physical).
VMEM_BUDGET = 14 * 1024 * 1024


def _round_up(n, m):
    return ((n + m - 1) // m) * m


def _pad2(a, rows, cols, dtype):
    r, c = a.shape
    return jnp.pad(a, ((0, rows - r), (0, cols - c))).astype(dtype)


def _mlp_kernel(x_ref,
                w1_ref, b1_ref,
                w2_ref, b2_ref,
                w3_ref, b3_ref,
                w4_ref, b4_ref,
                o_ref):
    # x_ref: (TB, Kp) bf16   w*: bf16 (lane-padded)   b*: (1,128) f32
    # o_ref: (TB, 128) bf16 lane-dense store; cols >= 3 are padding.
    h = jnp.dot(x_ref[...], w1_ref[...],
                preferred_element_type=jnp.float32) + b1_ref[...]
    h = jnp.maximum(h, 0.0)

    h = jnp.dot(h.astype(jnp.bfloat16), w2_ref[...],
                preferred_element_type=jnp.float32) + b2_ref[...]
    h = jnp.maximum(h, 0.0)

    h = jnp.dot(h.astype(jnp.bfloat16), w3_ref[...],
                preferred_element_type=jnp.float32) + b3_ref[...]
    h = jnp.maximum(h, 0.0)

    h = jnp.dot(h.astype(jnp.bfloat16), w4_ref[...],
                preferred_element_type=jnp.float32) + b4_ref[...]
    o_ref[...] = jax.nn.sigmoid(h).astype(o_ref.dtype)


def prepare_static_params(params):
    """Pad/cast the batch-independent weights once; reuse across forward calls."""
    return {
        "w2p": _pad2(params["w2"], LANES, LANES, jnp.bfloat16),
        "w3p": _pad2(params["w3"], LANES, LANES, jnp.bfloat16),
        "w4p": _pad2(params["w4"], LANES, LANES, jnp.bfloat16),
        "b2p": _pad2(params["b2"], 1, LANES, jnp.float32),
        "b3p": _pad2(params["b3"], 1, LANES, jnp.float32),
        "b4p": _pad2(params["b4"], 1, LANES, jnp.float32),
    }


def _choose_tiles(B, Kp, batch_tile):
    """Pick (batch_tile, padded_batch, vmem_limit) from a VMEM budget."""
    weight_bytes = (Kp * LANES + 3 * LANES * LANES) * 2 + 4 * LANES * 4
    resident = 2 * weight_bytes                 # default double-buffering of weights
    per_row = 2 * 2 * (Kp + LANES)              # bf16 x-tile + out-tile, double-buffered
    cap = (VMEM_BUDGET - resident) // per_row
    cap = max(SUBLANES, (cap // SUBLANES) * SUBLANES)
    tb = min(batch_tile, cap)

    b8 = _round_up(max(B, 1), SUBLANES)
    if b8 <= tb:
        # Small batch: still emit >= 2 grid steps so both v7x TensorCores get work.
        tb = max(SUBLANES, _round_up(pl.cdiv(b8, 2), SUBLANES))
        bp = 2 * tb
    else:
        bp = _round_up(b8, tb)

    vmem_need = resident + per_row * tb
    vmem_limit = int(min(max(2 * vmem_need, 8 << 20), 32 << 20))
    return tb, bp, vmem_limit


@functools.partial(jax.jit, static_argnames=("batch_tile", "slice_output"))
def my_model_forward(x, params, static_w=None, running_stats=None, *,
                     batch_tile=1024, slice_output=True):
    """x: (B, input_dim) f32 -> (B, 3) f32 (or padded (Bp,128) bf16 if slice_output=False)."""
    B, D = x.shape
    if static_w is None:
        static_w = prepare_static_params(params)

    # ---- BatchNorm1d folded into Linear #1 ----
    # Training-mode batch statistics (matches nn.BatchNorm1d in train mode).
    # For parity with model.eval(), pass running_stats=(running_mean, running_var).
    if running_stats is None:
        mean = jnp.mean(x, axis=0, keepdims=True)                  # (1, D)
        ex2 = jnp.mean(x * x, axis=0, keepdims=True)               # single pass
        var = jnp.maximum(ex2 - mean * mean, 0.0)                  # clamp cancellation
    else:
        mean, var = running_stats
        mean = jnp.reshape(mean, (1, D))
        var = jnp.reshape(var, (1, D))
    s = params["bn_gamma"] * jax.lax.rsqrt(var + BN_EPS)           # (1, D)
    t = params["bn_beta"] - mean * s                               # (1, D)
    w1f = params["w1"] * jnp.reshape(s, (D, 1))                    # fold in f32
    b1f = t @ params["w1"] + params["b1"]                          # (1, 122)

    # Only sublane-pad the feature dim (no 128-lane inflation of the x read).
    Kp = _round_up(D, SUBLANES)
    TB, Bp, vmem_limit = _choose_tiles(B, Kp, batch_tile)

    w1p = _pad2(w1f, Kp, LANES, jnp.bfloat16)
    b1p = _pad2(b1f, 1, LANES, jnp.float32)
    xp = jnp.pad(x, ((0, Bp - B), (0, Kp - D))).astype(jnp.bfloat16)

    def resident(shape):
        # Same block every grid step -> stays resident in VMEM (no re-DMA).
        # TODO(synk): pipeline_mode=pl.Buffered(1) would halve the resident weight
        # footprint on v7x; for very large input_dim add a K grid axis for layer 1.
        return pl.BlockSpec(shape, lambda i: (0, 0))

    weight_bytes = (Kp * LANES + 3 * LANES * LANES) * 2 + 4 * LANES * 4
    cost = pl.CostEstimate(
        flops=2 * B * (D * 122 + 122 * 60 + 60 * 30 + 30 * 3),
        transcendentals=Bp * LANES,               # sigmoid over all padded lanes
        bytes_accessed=int(Bp * Kp * 2 + Bp * LANES * 2 + weight_bytes),
    )

    out_p = pl.pallas_call(
        _mlp_kernel,
        out_shape=jax.ShapeDtypeStruct((Bp, LANES), jnp.bfloat16),
        grid=(Bp // TB,),
        in_specs=[
            pl.BlockSpec((TB, Kp), lambda i: (i, 0)),   # x: batch-tiled, real width
            resident((Kp, LANES)), resident((1, LANES)),
            resident((LANES, LANES)), resident((1, LANES)),
            resident((LANES, LANES)), resident((1, LANES)),
            resident((LANES, LANES)), resident((1, LANES)),
        ],
        out_specs=pl.BlockSpec((TB, LANES), lambda i: (i, 0)),
        compiler_params=pltpu.CompilerParams(
            dimension_semantics=("parallel",),
            vmem_limit_bytes=vmem_limit),
        cost_estimate=cost,
    )(xp, w1p, b1p,
      static_w["w2p"], static_w["b2p"],
      static_w["w3p"], static_w["b3p"],
      static_w["w4p"], static_w["b4p"])

    if slice_output:
        return out_p[:B, :3].astype(jnp.float32)
    # HBM-saving path: consumers take the padded (Bp,128) bf16 buffer directly
    # (rows >= B and cols >= 3 are padding) and slice lazily.
    return out_p


def init_params(input_dim, key):
    """Deterministic synthetic init (PyTorch-style uniform fan-in bounds)."""
    def linear_init(key, fan_in, fan_out):
        kw, kb = jax.random.split(key)
        bound = 1.0 / jnp.sqrt(float(fan_in))
        w = jax.random.uniform(kw, (fan_in, fan_out), jnp.float32, -bound, bound)
        b = jax.random.uniform(kb, (1, fan_out), jnp.float32, -bound, bound)
        return w, b

    k1, k2, k3, k4 = jax.random.split(key, 4)
    w1, b1 = linear_init(k1, input_dim, 122)
    w2, b2 = linear_init(k2, 122, 60)
    w3, b3 = linear_init(k3, 60, 30)
    w4, b4 = linear_init(k4, 30, 3)
    return {
        "bn_gamma": jnp.ones((1, input_dim), jnp.float32),   # BatchNorm1d weight init
        "bn_beta": jnp.zeros((1, input_dim), jnp.float32),   # BatchNorm1d bias init
        "w1": w1, "b1": b1,
        "w2": w2, "b2": b2,
        "w3": w3, "b3": b3,
        "w4": w4, "b4": b4,
    }


def _reference_forward(x, p):
    """Pure-JAX float32 reference of the PyTorch forward pass (train-mode BN)."""
    mean = jnp.mean(x, axis=0, keepdims=True)
    var = jnp.mean((x - mean) ** 2, axis=0, keepdims=True)
    h = (x - mean) / jnp.sqrt(var + BN_EPS) * p["bn_gamma"] + p["bn_beta"]
    h = jnp.maximum(h @ p["w1"] + p["b1"], 0.0)
    h = jnp.maximum(h @ p["w2"] + p["b2"], 0.0)
    h = jnp.maximum(h @ p["w3"] + p["b3"], 0.0)
    return jax.nn.sigmoid(h @ p["w4"] + p["b4"])


if __name__ == "__main__":
    key = jax.random.PRNGKey(0)
    k_x, k_p = jax.random.split(key)

    batch, input_dim = 8, 16
    x = jax.random.normal(k_x, (batch, input_dim), jnp.float32)
    params = init_params(input_dim, k_p)
    static_w = prepare_static_params(params)   # batch-independent, cached

    out = my_model_forward(x, params, static_w)
    out = jax.block_until_ready(out)

    ref = _reference_forward(x, params)
    assert out.shape == (batch, 3)
    # bf16 MXU operands + bf16 output store -> loose tolerance vs f32 reference.
    assert jnp.allclose(out, ref, atol=3e-2, rtol=3e-2), "mismatch vs reference"

    print("KERNEL_OK")
</pallas_src>

<mosaic_0001>
module attributes {stable_mosaic.version = 11 : i64} {
  func.func @_mlp_kernel(%arg0: i32, %arg1: memref<8x16xbf16, #tpu.memory_space<vmem>>, %arg2: memref<16x128xbf16, #tpu.memory_space<vmem>>, %arg3: memref<1x128xf32, #tpu.memory_space<vmem>>, %arg4: memref<128x128xbf16, #tpu.memory_space<vmem>>, %arg5: memref<1x128xf32, #tpu.memory_space<vmem>>, %arg6: memref<128x128xbf16, #tpu.memory_space<vmem>>, %arg7: memref<1x128xf32, #tpu.memory_space<vmem>>, %arg8: memref<128x128xbf16, #tpu.memory_space<vmem>>, %arg9: memref<1x128xf32, #tpu.memory_space<vmem>>, %arg10: memref<8x128xbf16, #tpu.memory_space<vmem>>) attributes {dimension_semantics = [#tpu.dimension_semantics<parallel>], iteration_bounds = array<i64: 2>, scalar_prefetch = 0 : i64, scratch_operands = 0 : i64, tpu.core_type = #tpu.core_type<tc>, window_params = [{transform_indices = @transform_0, window_bounds = array<i64: 8, 16>}, {pipeline_mode = #tpu.pipeline_mode<synchronous>, transform_indices = @transform_1, window_bounds = array<i64: 16, 128>}, {pipeline_mode = #tpu.pipeline_mode<synchronous>, transform_indices = @transform_2, window_bounds = array<i64: 1, 128>}, {pipeline_mode = #tpu.pipeline_mode<synchronous>, transform_indices = @transform_3, window_bounds = array<i64: 128, 128>}, {pipeline_mode = #tpu.pipeline_mode<synchronous>, transform_indices = @transform_4, window_bounds = array<i64: 1, 128>}, {pipeline_mode = #tpu.pipeline_mode<synchronous>, transform_indices = @transform_5, window_bounds = array<i64: 128, 128>}, {pipeline_mode = #tpu.pipeline_mode<synchronous>, transform_indices = @transform_6, window_bounds = array<i64: 1, 128>}, {pipeline_mode = #tpu.pipeline_mode<synchronous>, transform_indices = @transform_7, window_bounds = array<i64: 128, 128>}, {pipeline_mode = #tpu.pipeline_mode<synchronous>, transform_indices = @transform_8, window_bounds = array<i64: 1, 128>}, {transform_indices = @transform_9, window_bounds = array<i64: 8, 128>}]} {
    %c0 = arith.constant 0 : index
    %c0_0 = arith.constant 0 : index
    %0 = vector.load %arg1[%c0, %c0_0] : memref<8x16xbf16, #tpu.memory_space<vmem>>, vector<8x16xbf16>
    %c0_1 = arith.constant 0 : index
    %c0_2 = arith.constant 0 : index
    %1 = vector.load %arg2[%c0_1, %c0_2] : memref<16x128xbf16, #tpu.memory_space<vmem>>, vector<16x128xbf16>
    %cst = arith.constant dense<0.000000e+00> : vector<8x128xf32>
    %2 = tpu.matmul %0, %1, %cst {dimension_numbers = #tpu.dot_dimension_numbers<[1], [0], [0], [1], [0, 0, 1, 1], [], []>} : vector<8x16xbf16>, vector<16x128xbf16>, vector<8x128xf32> -> vector<8x128xf32>
    %c0_3 = arith.constant 0 : index
    %c0_4 = arith.constant 0 : index
    %3 = vector.load %arg3[%c0_3, %c0_4] : memref<1x128xf32, #tpu.memory_space<vmem>>, vector<1x128xf32>
    %4 = vector.broadcast %3 : vector<1x128xf32> to vector<8x128xf32>
    %5 = arith.addf %2, %4 : vector<8x128xf32>
    %cst_5 = arith.constant 0.000000e+00 : f32
    %6 = vector.broadcast %cst_5 : f32 to vector<8x128xf32>
    %7 = arith.maximumf %5, %6 : vector<8x128xf32>
    %8 = arith.truncf %7 : vector<8x128xf32> to vector<8x128xbf16>
    %c0_6 = arith.constant 0 : index
    %c0_7 = arith.constant 0 : index
    %9 = vector.load %arg4[%c0_6, %c0_7] : memref<128x128xbf16, #tpu.memory_space<vmem>>, vector<128x128xbf16>
    %cst_8 = arith.constant dense<0.000000e+00> : vector<8x128xf32>
    %10 = tpu.matmul %8, %9, %cst_8 {dimension_numbers = #tpu.dot_dimension_numbers<[1], [0], [0], [1], [0, 0, 1, 1], [], []>} : vector<8x128xbf16>, vector<128x128xbf16>, vector<8x128xf32> -> vector<8x128xf32>
    %c0_9 = arith.constant 0 : index
    %c0_10 = arith.constant 0 : index
    %11 = vector.load %arg5[%c0_9, %c0_10] : memref<1x128xf32, #tpu.memory_space<vmem>>, vector<1x128xf32>
    %12 = vector.broadcast %11 : vector<1x128xf32> to vector<8x128xf32>
    %13 = arith.addf %10, %12 : vector<8x128xf32>
    %cst_11 = arith.constant 0.000000e+00 : f32
    %14 = vector.broadcast %cst_11 : f32 to vector<8x128xf32>
    %15 = arith.maximumf %13, %14 : vector<8x128xf32>
    %16 = arith.truncf %15 : vector<8x128xf32> to vector<8x128xbf16>
    %c0_12 = arith.constant 0 : index
    %c0_13 = arith.constant 0 : index
    %17 = vector.load %arg6[%c0_12, %c0_13] : memref<128x128xbf16, #tpu.memory_space<vmem>>, vector<128x128xbf16>
    %cst_14 = arith.constant dense<0.000000e+00> : vector<8x128xf32>
    %18 = tpu.matmul %16, %17, %cst_14 {dimension_numbers = #tpu.dot_dimension_numbers<[1], [0], [0], [1], [0, 0, 1, 1], [], []>} : vector<8x128xbf16>, vector<128x128xbf16>, vector<8x128xf32> -> vector<8x128xf32>
    %c0_15 = arith.constant 0 : index
    %c0_16 = arith.constant 0 : index
    %19 = vector.load %arg7[%c0_15, %c0_16] : memref<1x128xf32, #tpu.memory_space<vmem>>, vector<1x128xf32>
    %20 = vector.broadcast %19 : vector<1x128xf32> to vector<8x128xf32>
    %21 = arith.addf %18, %20 : vector<8x128xf32>
    %cst_17 = arith.constant 0.000000e+00 : f32
    %22 = vector.broadcast %cst_17 : f32 to vector<8x128xf32>
    %23 = arith.maximumf %21, %22 : vector<8x128xf32>
    %24 = arith.truncf %23 : vector<8x128xf32> to vector<8x128xbf16>
    %c0_18 = arith.constant 0 : index
    %c0_19 = arith.constant 0 : index
    %25 = vector.load %arg8[%c0_18, %c0_19] : memref<128x128xbf16, #tpu.memory_space<vmem>>, vector<128x128xbf16>
    %cst_20 = arith.constant dense<0.000000e+00> : vector<8x128xf32>
    %26 = tpu.matmul %24, %25, %cst_20 {dimension_numbers = #tpu.dot_dimension_numbers<[1], [0], [0], [1], [0, 0, 1, 1], [], []>} : vector<8x128xbf16>, vector<128x128xbf16>, vector<8x128xf32> -> vector<8x128xf32>
    %c0_21 = arith.constant 0 : index
    %c0_22 = arith.constant 0 : index
    %27 = vector.load %arg9[%c0_21, %c0_22] : memref<1x128xf32, #tpu.memory_space<vmem>>, vector<1x128xf32>
    %28 = vector.broadcast %27 : vector<1x128xf32> to vector<8x128xf32>
    %29 = arith.addf %26, %28 : vector<8x128xf32>
    %30 = arith.negf %29 : vector<8x128xf32>
    %31 = math.exp %30 : vector<8x128xf32>
    %cst_23 = arith.constant 1.000000e+00 : f32
    %32 = vector.broadcast %cst_23 : f32 to vector<8x128xf32>
    %33 = arith.addf %32, %31 : vector<8x128xf32>
    %34 = arith.divf %32, %33 : vector<8x128xf32>
    %35 = arith.truncf %34 : vector<8x128xf32> to vector<8x128xbf16>
    %c0_24 = arith.constant 0 : index
    %c0_25 = arith.constant 0 : index
    %36 = vector.load %arg10[%c0_24, %c0_25] : memref<8x128xbf16, #tpu.memory_space<vmem>>, vector<8x128xbf16>
    tpu.vector_store %arg10[%c0_24, %c0_25], %35 {strides = array<i32>} : memref<8x128xbf16, #tpu.memory_space<vmem>>, vector<8x128xbf16>,
    return
  }
  func.func @transform_0(%arg0: i32) -> (i32, i32) {
    %c0_i32 = arith.constant 0 : i32
    %c0_i32_0 = arith.constant 0 : i32
    return %arg0, %c0_i32 : i32, i32
  }
  func.func @transform_1(%arg0: i32) -> (i32, i32) {
    %c0_i32 = arith.constant 0 : i32
    %c0_i32_0 = arith.constant 0 : i32
    %c0_i32_1 = arith.constant 0 : i32
    return %c0_i32, %c0_i32_0 : i32, i32
  }
  func.func @transform_2(%arg0: i32) -> (i32, i32) {
    %c0_i32 = arith.constant 0 : i32
    %c0_i32_0 = arith.constant 0 : i32
    %c0_i32_1 = arith.constant 0 : i32
    return %c0_i32, %c0_i32_0 : i32, i32
  }
  func.func @transform_3(%arg0: i32) -> (i32, i32) {
    %c0_i32 = arith.constant 0 : i32
    %c0_i32_0 = arith.constant 0 : i32
    %c0_i32_1 = arith.constant 0 : i32
    return %c0_i32, %c0_i32_0 : i32, i32
  }
  func.func @transform_4(%arg0: i32) -> (i32, i32) {
    %c0_i32 = arith.constant 0 : i32
    %c0_i32_0 = arith.constant 0 : i32
    %c0_i32_1 = arith.constant 0 : i32
    return %c0_i32, %c0_i32_0 : i32, i32
  }
  func.func @transform_5(%arg0: i32) -> (i32, i32) {
    %c0_i32 = arith.constant 0 : i32
    %c0_i32_0 = arith.constant 0 : i32
    %c0_i32_1 = arith.constant 0 : i32
    return %c0_i32, %c0_i32_0 : i32, i32
  }
  func.func @transform_6(%arg0: i32) -> (i32, i32) {
    %c0_i32 = arith.constant 0 : i32
    %c0_i32_0 = arith.constant 0 : i32
    %c0_i32_1 = arith.constant 0 : i32
    return %c0_i32, %c0_i32_0 : i32, i32
  }
  func.func @transform_7(%arg0: i32) -> (i32, i32) {
    %c0_i32 = arith.constant 0 : i32
    %c0_i32_0 = arith.constant 0 : i32
    %c0_i32_1 = arith.constant 0 : i32
    return %c0_i32, %c0_i32_0 : i32, i32
  }
  func.func @transform_8(%arg0: i32) -> (i32, i32) {
    %c0_i32 = arith.constant 0 : i32
    %c0_i32_0 = arith.constant 0 : i32
    %c0_i32_1 = arith.constant 0 : i32
    return %c0_i32, %c0_i32_0 : i32, i32
  }
  func.func @transform_9(%arg0: i32) -> (i32, i32) {
    %c0_i32 = arith.constant 0 : i32
    %c0_i32_0 = arith.constant 0 : i32
    return %arg0, %c0_i32 : i32, i32
  }
}

</mosaic_0001>

<bundles_post_ra>
// kernel: my_model_forward.1
= control target key start
LH: loop header
LB: loop body
LE: loop exit
PB: predicated region body
PF: predicated region fallthrough
CT: control target
= control target key end

     0   :  { %14 = vsyncpa [#allocation3], 0  ;;  %s1307_s0 = inlined_call_operand.vmem [shape: bf16[16,16], index: 0, kind: input, shape index: {}]   ;;  %s1308_s1 = inlined_call_operand.vmem [shape: bf16[16,128], index: 1, kind: input, shape index: {}]   ;;  %s1309_s2 = inlined_call_operand.vmem [shape: f32[1,128], index: 2, kind: input, shape index: {}]   ;;  %s1310_s3 = inlined_call_operand.vmem [shape: bf16[128,128], index: 3, kind: input, shape index: {}]   ;;  %s1311_s4 = inlined_call_operand.vmem [shape: f32[1,128], index: 4, kind: input, shape index: {}]   ;;  %s1312_s5 = inlined_call_operand.hbm [shape: bf16[128,128], index: 5, kind: input, shape index: {}]   ;;  %s1313_s6 = inlined_call_operand.vmem [shape: f32[1,128], index: 6, kind: input, shape index: {}]   ;;  %s1314_s7 = inlined_call_operand.hbm [shape: bf16[128,128], index: 7, kind: input, shape index: {}]   ;;  %s1315_s8 = inlined_call_operand.vmem [shape: f32[1,128], index: 8, kind: input, shape index: {}]   ;;  %s1316_s9 = inlined_call_operand.vmem [shape: bf16[16,128], index: 9, kind: output, shape index: {}]  }
   0x1   :  { %15 = vsyncpa [#allocation5], 0  ;;  %s1166_s30 = smov 0  }
   0x2 LB: > { %s1172_s10 = sadd.s32 4294967295, %s1108_s30   ;;  %p843_p0 = scmp.ge.s32.totalorder %s1108_s30, 1  ;;  %s1108_s30 = sphi %s1166_s30, %s21_s30  }
   0x3   : > { %p246_p1 = scmp.lt.s32.totalorder %s1108_s30, 3  ;;  %s1110_s11 = smov [#allocation2]  }
   0x4   : > { %s270_s12 = sshll.u32 %s1110_s11, 4  ;;  %p995_p3 = scmp.eq.s32.totalorder %s1172_s10, 0  ;;  %s271_s12 = int_to_ptr.vmem [resolvable:$true] %s270_s12 }
   0x5   : > { %p1176_p2 = pnand %p843_p0, %p246_p1  ;;  %s1111_s14 = smov [#allocation4]  }
   0x6   : > { %s286_s15 = sshll.u32 %s1111_s14, 4  ;;  %s1053_s17 = scalar_lea.vmem %s271_s12, 1024  ;;  %s287_s15 = int_to_ptr.vmem [resolvable:$true] %s286_s15 }
   0x7   : > { %p988_p4 = pneg %p1176_p2  ;;  %p1054_p7 = scmp.ne.s32.totalorder %s271_s12, %s1053_s17 }
   0x8   : > { %p1061_p10 = scmp.lt.s32.totalorder %s271_s12, %s271_s12  ;;  %p1062_p11 = scmp.lt.s32.totalorder %s1053_s17, %s1053_s17 }
   0x9   : > { %p1185_p5 = pnand %p995_p3, %p988_p4 }
   0xa   : > { %p1063_p12 = por %p1062_p11, %p1061_p10 }
   0xb   : > { %p1044_p6 = pneg %p1185_p5 }
   0xd   : > { %p1056_p8 = pnand %p1054_p7, %p1044_p6 }
   0xf   : > { %p1057_p9 = pneg %p1056_p8 }
  0x11   : > { %p1064_p13 = pnand %p1063_p12, %p1057_p9 }
  0x13   : > { %1067 = shalt.err (!%p1064_p13)
}
  0x14   : > { %s1112_s18 = smov 64   ;;  %s1113_s19 = smov 4  }
  0x15   : > { %991 = dma.hbm_to_vmem [thread:$0]  (!%p1185_p5), %s1312_s5, 1024, %s271_s12, [#allocation3], %s1112_s18, %s1112_s18, %s1113_s19  }
  0x16   : > { %s1079_s22 = scalar_lea.vmem %s287_s15, 1024  ;;  %p1087_p7 = scmp.lt.s32.totalorder %s287_s15, %s287_s15 }
  0x17   : > { %p1080_p0 = scmp.ne.s32.totalorder %s287_s15, %s1079_s22  ;;  %p1088_p8 = scmp.lt.s32.totalorder %s1079_s22, %s1079_s22 }
  0x19   : > { %p1082_p1 = pnand %p1080_p0, %p1044_p6  ;;  %p1089_p10 = por %p1088_p8, %p1087_p7 }
  0x1b   : > { %p1083_p4 = pneg %p1082_p1 }
  0x1d   : > { %p1090_p9 = pnand %p1089_p10, %p1083_p4 }
  0x1f   : > { %1093 = shalt.err (!%p1090_p9)
}
  0x20   : > { %994 = dma.hbm_to_vmem [thread:$0]  (!%p1185_p5), %s1314_s7, 1024, %s287_s15, [#allocation5], %s1112_s18, %s1112_s18, %s1113_s19  }
  0x21   : > { %312 = sbr.rel (%p1176_p2) target bundleno = 874 (0x36a), region = 56 }
  0x26   : > { %1099 = dma.done.wait (%p995_p3), [#allocation3], 1024  }
  0x27   : > { %1101 = vsyncadd (%p995_p3), [#allocation3], 4294966272 }
  0x28   : > { %1103 = dma.done.wait (%p995_p3), [#allocation5], 1024  }
  0x29   : > { %1105 = vsyncadd (%p995_p3), [#allocation5], 4294966272  ;;  %p350_p6 = scmp.lt.s32.totalorder %s1172_s10, 1  ;;  %v1114_v0 = vmov 0.0   ;;  %vm1115_vm0 = vmmov 0   ;;  %v1013_v1 = vld [vmem:[%s1308_s1] sm:$0xff]  }
  0x2a   : > { %914 = vmatprep.subr.bf16.mxu0 %v1114_v0  ;;  %916 = vmatprep.mubr.msk.bf16.mxu0 %vm1115_vm0, %v1114_v0  ;;  %vm375_vm1 = vcmask 130048   ;;  %v1014_v3 = vld [vmem:[%s1310_s3 + $0x38] sm:$0xff]   ;;  %v1015_v4 = vld [vmem:[%s1310_s3 + $0x30] sm:$0xff]   ;;  %v1016_v5 = vld [vmem:[%s1310_s3 + $0x28] sm:$0xff]  }
  0x2b   : > { %s1320_s10 = smov (!%p350_p6, %s1172_s10), 1  ;;  %920 = vmatprep.subr.bf16.mxu1 %v1114_v0  ;;  %936 = vmatprep.mubr.msk.bf16.mxu1 %vm1115_vm0, %v1114_v0  ;;  %v1017_v6 = vld [vmem:[%s1310_s3 + $0x20] sm:$0xff]   ;;  %v1018_v7 = vld [vmem:[%s1310_s3 + $0x18] sm:$0xff]   ;;  %v1019_v8 = vld [vmem:[%s1310_s3 + $0x10] sm:$0xff]  }
  0x2c   : > { %s850_s25 = sshll.u32 %s1320_s10, 2  ;;  %915 = vmatpush3.bf16.msra.mxu0 %v1013_v1  ;;  %921 = vmatpush3.bf16.msra.mxu1 %v1014_v3  ;;  %v1020_v9 = vld [vmem:[%s1310_s3 + $0x8] sm:$0xff]   ;;  %v1021_v10 = vld [vmem:[%s1310_s3] sm:$0xff]   ;;  %v1022_v11 = vld [vmem:[#allocation2 + $0x38] sm:$0xff]  }
  0x2d   : > { %s353_s28 = scalar_lea.vmem %s1307_s0, %s850_s25  ;;  %940 = vmatprep.subr.bf16.mxu0 %v1114_v0  ;;  %922 = vmatprep.subr.bf16.mxu1 %v1114_v0  ;;  %v1023_v12 = vld [vmem:[#allocation2 + $0x30] sm:$0xff]   ;;  %v1024_v13 = vld [vmem:[#allocation2 + $0x28] sm:$0xff]   ;;  %v1025_v14 = vld [vmem:[#allocation2 + $0x20] sm:$0xff]   ;;  %s357_s20 = scalar_lea.vmem %s1316_s9, %s850_s25 }
  0x2e   : > { %v359_v2 = vld [vmem:[%s353_s28] sm:$0xf]  ;;  %v1026_v15 = vld [vmem:[#allocation2 + $0x18] sm:$0xff]   ;;  %v1027_v16 = vld [vmem:[#allocation2 + $0x10] sm:$0xff]  }
  0x2f   : > { %917 = vmatmul.mubr.msk.bf16.vlgmr.msra.gmra.mxu0 %vm375_vm1, %v359_v2  ;;  %v852_v17 = vld [vmem:[%s1309_s2] ss:$0 sm:$0xff]  ;;  %v1028_v25 = vld [vmem:[#allocation2 + $0x8] sm:$0xff]   ;;  %v1030_v27 = vld [vmem:[#allocation4 + $0x38] sm:$0xff]  }
  0x30   : > { %956 = vmatprep.mubr.msk.bf16.mxu0 %vm1115_vm0, %v1114_v0  ;;  %923 = vmatpush3.bf16.msra.mxu1 %v1015_v4  ;;  %v1029_v26 = vld [vmem:[#allocation2] sm:$0xff]   ;;  %v1031_v28 = vld [vmem:[#allocation4 + $0x30] sm:$0xff]   ;;  %v1032_v29 = vld [vmem:[#allocation4 + $0x28] sm:$0xff]  }
  0x31   : > { %924 = vmatprep.subr.bf16.mxu1 %v1114_v0  ;;  %941 = vmatpush3.bf16.msra.mxu0 %v1022_v11  ;;  %v1033_v30 = vld [vmem:[#allocation4 + $0x20] sm:$0xff]   ;;  %v1034_v31 = vld [vmem:[#allocation4 + $0x18] sm:$0xff]   ;;  %v1035_v32 = vld [vmem:[#allocation4 + $0x10] sm:$0xff]  }
  0x32   : > { %942 = vmatprep.subr.bf16.mxu0 %v1114_v0  ;;  %v855_v33 = vld [vmem:[%s1311_s4] ss:$0 sm:$0xff]  ;;  %v1036_v41 = vld [vmem:[#allocation4 + $0x8] sm:$0xff]  }
  0x33   : > { %v1037_v42 = vld [vmem:[#allocation4] sm:$0xff]  }
  0x34   : > { %925 = vmatpush3.bf16.msra.mxu1 %v1016_v5  ;;  %v864_v43 = vld [vmem:[%s1313_s6] ss:$0 sm:$0xff] }
  0x35   : > { %926 = vmatprep.subr.bf16.mxu1 %v1114_v0  ;;  %943 = vmatpush3.bf16.msra.mxu0 %v1023_v12  ;;  %v873_v51 = vld [vmem:[%s1315_s8] ss:$0 sm:$0xff] }
  0x36   : > { %944 = vmatprep.subr.bf16.mxu0 %v1114_v0 }
  0x38   : > { %927 = vmatpush3.bf16.msra.mxu1 %v1017_v6 }
  0x39   : > { %928 = vmatprep.subr.bf16.mxu1 %v1114_v0  ;;  %945 = vmatpush3.bf16.msra.mxu0 %v1024_v13 }
  0x3a   : > { %946 = vmatprep.subr.bf16.mxu0 %v1114_v0 }
  0x3c   : > { %929 = vmatpush3.bf16.msra.mxu1 %v1018_v7 }
  0x3d   : > { %930 = vmatprep.subr.bf16.mxu1 %v1114_v0  ;;  %947 = vmatpush3.bf16.msra.mxu0 %v1025_v14 }
  0x3e   : > { %948 = vmatprep.subr.bf16.mxu0 %v1114_v0 }
  0x40   : > { %931 = vmatpush3.bf16.msra.mxu1 %v1019_v8 }
  0x41   : > { %932 = vmatprep.subr.bf16.mxu1 %v1114_v0  ;;  %949 = vmatpush3.bf16.msra.mxu0 %v1026_v15 }
  0x42   : > { %950 = vmatprep.subr.bf16.mxu0 %v1114_v0 }
  0x44   : > { %933 = vmatpush3.bf16.msra.mxu1 %v1020_v9 }
  0x45   : > { %934 = vmatprep.subr.bf16.mxu1 %v1114_v0  ;;  %951 = vmatpush3.bf16.msra.mxu0 %v1027_v16 }
  0x46   : > { %952 = vmatprep.subr.bf16.mxu0 %v1114_v0 }
  0x48   : > { %935 = vmatpush3.bf16.msra.mxu1 %v1021_v10 }
  0x49   : > { %960 = vmatprep.subr.bf16.mxu1 %v1114_v0  ;;  %953 = vmatpush3.bf16.msra.mxu0 %v1028_v25 }
  0x4a   : > { %954 = vmatprep.subr.bf16.mxu0 %v1114_v0 }
  0x4d   : > { %955 = vmatpush3.bf16.msra.mxu0 %v1029_v26 }
  0xef   : > { %v413_v18 = vpop.f32.mrf.mxu0 }
  0xf0   : > { %v414_v19 = vadd.f32 %v852_v17, %v413_v18 }
  0xf1   : > { %v918_v20 = vpop.f32.mrf.mxu0 }
  0xf2   : > { %v419_v21 = vmax.f32 %v414_v19, 0.0 }
  0xf3   : > { %v416_v22 = vpop.f32.mrf.mxu0 }
  0xf4   : > { %v420_v23 = vpack.c.bf16 %v419_v21, %v419_v21 }
  0xf5   : > { %v919_v24 = vpop.f32.mrf.mxu0 }
  0xf6   : > { %937 = vmatmul.mubr.bf16.vlgmr.msra.gmra.mxu1 %v420_v23 }
  0xf7   : > { %976 = vmatprep.mubr.msk.bf16.mxu1 %vm1115_vm0, %v1114_v0  ;;  %961 = vmatpush3.bf16.msra.mxu1 %v1030_v27 }
  0xf8   : > { %962 = vmatprep.subr.bf16.mxu1 %v1114_v0 }
  0xfb   : > { %963 = vmatpush3.bf16.msra.mxu1 %v1031_v28 }
  0xfc   : > { %964 = vmatprep.subr.bf16.mxu1 %v1114_v0 }
  0xff   : > { %965 = vmatpush3.bf16.msra.mxu1 %v1032_v29 }
 0x100   : > { %966 = vmatprep.subr.bf16.mxu1 %v1114_v0 }
 0x103   : > { %967 = vmatpush3.bf16.msra.mxu1 %v1033_v30 }
 0x104   : > { %968 = vmatprep.subr.bf16.mxu1 %v1114_v0 }
 0x107   : > { %969 = vmatpush3.bf16.msra.mxu1 %v1034_v31 }
 0x108   : > { %970 = vmatprep.subr.bf16.mxu1 %v1114_v0 }
 0x10b   : > { %971 = vmatpush3.bf16.msra.mxu1 %v1035_v32 }
 0x10c   : > { %972 = vmatprep.subr.bf16.mxu1 %v1114_v0 }
 0x10f   : > { %973 = vmatpush3.bf16.msra.mxu1 %v1036_v41 }
 0x110   : > { %974 = vmatprep.subr.bf16.mxu1 %v1114_v0 }
 0x113   : > { %975 = vmatpush3.bf16.msra.mxu1 %v1037_v42 }
 0x1b6   : > { %v526_v34 = vpop.f32.mrf.mxu1 }
 0x1b7   : > { %v527_v35 = vadd.f32 %v855_v33, %v526_v34 }
 0x1b8   : > { %v938_v36 = vpop.f32.mrf.mxu1 }
 0x1b9   : > { %v532_v37 = vmax.f32 %v527_v35, 0.0 }
 0x1ba   : > { %v529_v38 = vpop.f32.mrf.mxu1 }
 0x1bb   : > { %v533_v39 = vpack.c.bf16 %v532_v37, %v532_v37 }
 0x1bc   : > { %v939_v40 = vpop.f32.mrf.mxu1 }
 0x1bd   : > { %957 = vmatmul.mubr.bf16.vlgmr.msra.gmra.mxu0 %v533_v39 }
 0x27d   : > { %v639_v44 = vpop.f32.mrf.mxu0 }
 0x27e   : > { %v640_v45 = vadd.f32 %v864_v43, %v639_v44 }
 0x27f   : > { %v958_v46 = vpop.f32.mrf.mxu0 }
 0x280   : > { %v645_v47 = vmax.f32 %v640_v45, 0.0 }
 0x281   : > { %v642_v48 = vpop.f32.mrf.mxu0 }
 0x282   : > { %v646_v49 = vpack.c.bf16 %v645_v47, %v645_v47 }
 0x283   : > { %v959_v50 = vpop.f32.mrf.mxu0 }
 0x284   : > { %977 = vmatmul.mubr.bf16.vlgmr.msra.gmra.mxu1 %v646_v49 }
 0x344   : > { %v752_v52 = vpop.f32.mrf.mxu1 }
 0x345   : > { %v753_v53 = vadd.f32 %v873_v51, %v752_v52 }
 0x346   : > { %v978_v54 = vpop.f32.mrf.mxu1 }
 0x347   : > { %v882_v55 = vmul.f32 -1.442695, %v753_v53 }
 0x348   : > { %v755_v56 = vpop.f32.mrf.mxu1 }
 0x349   : > { %1038 = vpow2.f32 %v882_v55 }
 0x34a   : > { %v979_v57 = vpop.f32.mrf.mxu1 }
 0x356   : > { %v1039_v58 = vpop.eup %1038 }
 0x357   : > { %v761_v59 = vadd.f32 1.0, %v1039_v58 }
 0x359   : > { %1040 = vrcp.f32 %v761_v59 }
 0x366   : > { %v1041_v60 = vpop.eup %1040 }
 0x367   : > { %v764_v61 = vpack.c.bf16 %v1041_v60, %v1041_v60 }
 0x369   : > { %765 = vst [vmem:[%s357_s20] sm:$0xf] %v764_v61 }
 0x36a PF: > { %s21_s30 = sadd.s32 1, %s1108_s30  }
 0x36b   : > { %p18_p2 = scmp.ge.s32.totalorder %s21_s30, 4  }
 0x36d   :  { %20 = sbr.rel (!%p18_p2) target bundleno = 2 (0x2), region = 95 }
 0x372   :  { %785 = vsyncpa [#allocation3], 1 }
 0x373   :  { %787 = vsyncpa [#allocation3 + $0x1], 1 }
 0x374   :  { %788 = vsyncpa [#allocation5], 1 }

</bundles_post_ra>
